<compile_context>
chip_gen: v7x
topology: tpu7x:2x2x1
jax: 0.10.0
libtpu: 0.0.40
codegen_flags: <defaults>
</compile_context>

<pallas_src>
import functools

import jax
import jax.numpy as jnp
from jax import lax
from jax.experimental import pallas as pl
from jax.experimental.pallas import tpu as pltpu

NEG_SLOPE = 0.01  # torch.nn.LeakyReLU default negative_slope


def _conv_lrelu_kernel(x_ref, w_ref, b_ref, o_ref, *, shifts, m):
    """One padded image per grid step.

    x_ref: (C, L_in)       flattened reflection-padded image (+ zero tail),
                           compute dtype (bf16 by default)
    w_ref: (OC, C*KH*KW)   tap-major weight panel (VMEM resident)
    b_ref: (OC, 1)         float32 bias (VMEM resident)
    o_ref: (OC, M)         stride-1 'wide' output, lane-dense (M % 128 == 0)
    """
    x = x_ref[...]  # tiny: lives in vregs / VMEM, loaded once per image
    # On-chip im2col panel: row block t holds the image shifted left by
    # shifts[t] = kh*Wp + kw.  The static slices are in-register lane shifts
    # (XLU relayouts) of the already-loaded value -- they do not re-read VMEM
    # per tap, and the panel never exists in HBM.
    panel = jnp.concatenate([x[:, d:d + m] for d in shifts], axis=0)
    # Single MXU matmul, contraction depth C*KH*KW, f32 accumulation.
    acc = jnp.dot(w_ref[...], panel, preferred_element_type=jnp.float32)
    # Epilogue: one f32 bias add + LeakyReLU select, then a lane-dense store.
    acc = acc + b_ref[...]
    o_ref[...] = jnp.where(acc >= 0.0, acc, NEG_SLOPE * acc).astype(o_ref.dtype)


def leaky_relu_conv2d(x, weight, bias, *, stride, padding,
                      compute_dtype=jnp.bfloat16, vmem_limit_bytes=None):
    """ReflectionPad2d(padding) -> Conv2d(stride, bias=True) -> LeakyReLU(0.01).

    x: (N, C, H, W), weight: (OC, C, KH, KW), bias: (OC,). Returns NCHW in
    x.dtype.  MXU math runs in `compute_dtype` (bfloat16 by default) with
    float32 accumulation; pass compute_dtype=jnp.float32 for exact f32 conv.
    """
    N, C, H, W = x.shape
    OC, wc, KH, KW = weight.shape
    assert wc == C
    s = int(stride)
    assert s >= 1

    # ReflectionPad2d (XLA glue).  Same constraint as PyTorch.
    if padding > 0:
        assert padding <= H - 1 and padding <= W - 1, \
            "ReflectionPad2d requires padding <= spatial size - 1"
        x = jnp.pad(x, ((0, 0), (0, 0), (padding, padding), (padding, padding)),
                    mode="reflect")
    Hp, Wp = x.shape[2], x.shape[3]
    OH = (Hp - KH) // s + 1
    OW = (Wp - KW) // s + 1

    # The kernel computes the stride-1 convolution over the whole padded image
    # in row-major flattened form: wide output position p = r*Wp + c reads
    # input position p + kh*Wp + kw for tap (kh, kw).  Columns c > Wp-KW wrap
    # into the next image row and are garbage; they, the lane padding and (for
    # stride > 1) the skipped rows/cols are discarded by the cheap slice below.
    OH1 = Hp - KH + 1                        # stride-1 wide output rows
    d_max = (KH - 1) * Wp + (KW - 1)         # largest tap shift
    M = ((OH1 * Wp + 127) // 128) * 128      # lane-dense wide output length
    L_in = ((M + d_max + 127) // 128) * 128  # image + zero tail (all taps in range)

    x_flat = x.reshape(N, C, Hp * Wp)
    x_flat = jnp.pad(x_flat, ((0, 0), (0, 0), (0, L_in - Hp * Wp)))
    x_flat = x_flat.astype(compute_dtype)

    # Tap-major weight panel matching the panel row order in the kernel:
    #   w_panel[oc, (kh*KW + kw)*C + c] = weight[oc, c, kh, kw]
    K0 = C * KH * KW
    w_panel = jnp.transpose(weight, (0, 2, 3, 1)).reshape(OC, K0).astype(compute_dtype)
    b_col = bias.reshape(OC, 1).astype(jnp.float32)

    shifts = tuple(kh * Wp + kw for kh in range(KH) for kw in range(KW))
    kernel = functools.partial(_conv_lrelu_kernel, shifts=shifts, m=M)

    cdt = jnp.dtype(compute_dtype).itemsize
    cost = pl.CostEstimate(
        flops=2 * N * OC * K0 * M,
        transcendentals=0,
        bytes_accessed=(cdt * (N * C * L_in + OC * K0) + 4 * OC
                        + x.dtype.itemsize * N * OC * M),
    )

    out_wide = pl.pallas_call(
        kernel,
        out_shape=jax.ShapeDtypeStruct((N, OC, M), x.dtype),
        grid_spec=pltpu.PrefetchScalarGridSpec(
            num_scalar_prefetch=0,
            grid=(N,),   # >= 2 "parallel" steps lets v7x shard over its 2 TCs
            in_specs=[
                pl.BlockSpec((None, C, L_in), lambda n: (n, 0, 0)),
                pl.BlockSpec((OC, K0), lambda n: (0, 0)),
                pl.BlockSpec((OC, 1), lambda n: (0, 0)),
            ],
            out_specs=pl.BlockSpec((None, OC, M), lambda n: (n, 0, 0)),
        ),
        compiler_params=pltpu.CompilerParams(
            dimension_semantics=("parallel",),
            vmem_limit_bytes=vmem_limit_bytes),
        cost_estimate=cost,
    )(x_flat, w_panel, b_col)

    # Un-flatten, drop wrapped/padded garbage columns, apply stride, -> NCHW.
    out = out_wide[:, :, :OH1 * Wp].reshape(N, OC, OH1, Wp)
    out = out[:, :, ::s, ::s][:, :, :OH, :OW]
    return out


def _reference(x, weight, bias, *, stride, padding):
    if padding > 0:
        x = jnp.pad(x, ((0, 0), (0, 0), (padding, padding), (padding, padding)),
                    mode="reflect")
    y = lax.conv_general_dilated(
        x, weight, window_strides=(stride, stride), padding="VALID",
        dimension_numbers=("NCHW", "OIHW", "NCHW"),
        precision=lax.Precision.HIGHEST)
    y = y + bias.reshape(1, -1, 1, 1)
    return jnp.where(y >= 0.0, y, NEG_SLOPE * y)


if __name__ == "__main__":
    # LeakyReLUConv2d(inplanes=4, outplanes=8, kernel_size=3, stride=1, padding=1)
    inplanes, outplanes, kernel_size, stride, padding = 4, 8, 3, 1, 1
    key = jax.random.PRNGKey(0)
    kx, kw_key, kb = jax.random.split(key, 3)

    x = jax.random.normal(kx, (2, inplanes, 16, 16), dtype=jnp.float32)
    fan_in = inplanes * kernel_size * kernel_size
    bound = 1.0 / (fan_in ** 0.5)
    weight = jax.random.uniform(
        kw_key, (outplanes, inplanes, kernel_size, kernel_size),
        minval=-bound, maxval=bound, dtype=jnp.float32)
    bias = jax.random.uniform(
        kb, (outplanes,), minval=-bound, maxval=bound, dtype=jnp.float32)

    y = leaky_relu_conv2d(x, weight, bias, stride=stride, padding=padding)
    y = jax.block_until_ready(y)
    assert y.shape == (2, outplanes, 16, 16), y.shape

    # Tight check: the kernel multiplies bf16-rounded operands exactly and
    # accumulates in f32, so it must match an f32 reference evaluated on the
    # bf16-rounded inputs (differences are summation-order only).
    xq = x.astype(jnp.bfloat16).astype(jnp.float32)
    wq = weight.astype(jnp.bfloat16).astype(jnp.float32)
    y_ref_q = _reference(xq, wq, bias, stride=stride, padding=padding)
    assert jnp.allclose(y, y_ref_q, atol=1e-4, rtol=1e-4), \
        float(jnp.max(jnp.abs(y - y_ref_q)))

    # Loose check against the full-f32 module semantics (bf16 input rounding).
    y_ref = _reference(x, weight, bias, stride=stride, padding=padding)
    assert jnp.allclose(y, y_ref, atol=3e-2, rtol=3e-2), \
        float(jnp.max(jnp.abs(y - y_ref)))

    print("KERNEL_OK")
</pallas_src>

<mosaic_0001>
module attributes {stable_mosaic.version = 11 : i64} {
  func.func @_conv_lrelu_kernel(%arg0: i32, %arg1: memref<1x4x512xbf16, #tpu.memory_space<vmem>>, %arg2: memref<8x36xbf16, #tpu.memory_space<vmem>>, %arg3: memref<8x1xf32, #tpu.memory_space<vmem>>, %arg4: memref<1x8x384xf32, #tpu.memory_space<vmem>>) attributes {dimension_semantics = [#tpu.dimension_semantics<parallel>], iteration_bounds = array<i64: 2>, scalar_prefetch = 0 : i64, scratch_operands = 0 : i64, tpu.core_type = #tpu.core_type<tc>, window_params = [{transform_indices = @transform_0, window_bounds = array<i64: 1, 4, 512>}, {pipeline_mode = #tpu.pipeline_mode<synchronous>, transform_indices = @transform_1, window_bounds = array<i64: 8, 36>}, {pipeline_mode = #tpu.pipeline_mode<synchronous>, transform_indices = @transform_2, window_bounds = array<i64: 8, 1>}, {transform_indices = @transform_3, window_bounds = array<i64: 1, 8, 384>}]} {
    %c0 = arith.constant 0 : index
    %c0_0 = arith.constant 0 : index
    %c0_1 = arith.constant 0 : index
    %0 = vector.load %arg1[%c0, %c0_0, %c0_1] : memref<1x4x512xbf16, #tpu.memory_space<vmem>>, vector<1x4x512xbf16>
    %1 = vector.shape_cast %0 : vector<1x4x512xbf16> to vector<4x512xbf16>
    %2 = vector.extract_strided_slice %1 {offsets = [0, 0], sizes = [4, 384], strides = [1, 1]} : vector<4x512xbf16> to vector<4x384xbf16>
    %3 = vector.extract_strided_slice %1 {offsets = [0, 1], sizes = [4, 384], strides = [1, 1]} : vector<4x512xbf16> to vector<4x384xbf16>
    %4 = vector.extract_strided_slice %1 {offsets = [0, 2], sizes = [4, 384], strides = [1, 1]} : vector<4x512xbf16> to vector<4x384xbf16>
    %5 = vector.extract_strided_slice %1 {offsets = [0, 18], sizes = [4, 384], strides = [1, 1]} : vector<4x512xbf16> to vector<4x384xbf16>
    %6 = vector.extract_strided_slice %1 {offsets = [0, 19], sizes = [4, 384], strides = [1, 1]} : vector<4x512xbf16> to vector<4x384xbf16>
    %7 = vector.extract_strided_slice %1 {offsets = [0, 20], sizes = [4, 384], strides = [1, 1]} : vector<4x512xbf16> to vector<4x384xbf16>
    %8 = vector.extract_strided_slice %1 {offsets = [0, 36], sizes = [4, 384], strides = [1, 1]} : vector<4x512xbf16> to vector<4x384xbf16>
    %9 = vector.extract_strided_slice %1 {offsets = [0, 37], sizes = [4, 384], strides = [1, 1]} : vector<4x512xbf16> to vector<4x384xbf16>
    %10 = vector.extract_strided_slice %1 {offsets = [0, 38], sizes = [4, 384], strides = [1, 1]} : vector<4x512xbf16> to vector<4x384xbf16>
    %11 = tpu.concatenate %2, %3, %4, %5, %6, %7, %8, %9, %10 in 0 : vector<4x384xbf16>, vector<4x384xbf16>, vector<4x384xbf16>, vector<4x384xbf16>, vector<4x384xbf16>, vector<4x384xbf16>, vector<4x384xbf16>, vector<4x384xbf16>, vector<4x384xbf16> -> vector<36x384xbf16>
    %c0_2 = arith.constant 0 : index
    %c0_3 = arith.constant 0 : index
    %12 = vector.load %arg2[%c0_2, %c0_3] : memref<8x36xbf16, #tpu.memory_space<vmem>>, vector<8x36xbf16>
    %cst = arith.constant dense<0.000000e+00> : vector<8x384xf32>
    %13 = tpu.matmul %12, %11, %cst {dimension_numbers = #tpu.dot_dimension_numbers<[1], [0], [0], [1], [0, 0, 1, 1], [], []>} : vector<8x36xbf16>, vector<36x384xbf16>, vector<8x384xf32> -> vector<8x384xf32>
    %c0_4 = arith.constant 0 : index
    %c0_5 = arith.constant 0 : index
    %14 = vector.load %arg3[%c0_4, %c0_5] : memref<8x1xf32, #tpu.memory_space<vmem>>, vector<8x1xf32>
    %15 = vector.broadcast %14 : vector<8x1xf32> to vector<8x384xf32>
    %16 = arith.addf %13, %15 : vector<8x384xf32>
    %cst_6 = arith.constant 0.000000e+00 : f32
    %17 = vector.broadcast %cst_6 : f32 to vector<8x384xf32>
    %18 = arith.cmpf oge, %16, %17 : vector<8x384xf32>
    %cst_7 = arith.constant 0.00999999977 : f32
    %19 = vector.broadcast %cst_7 : f32 to vector<8x384xf32>
    %20 = arith.mulf %19, %16 : vector<8x384xf32>
    %21 = arith.select %18, %16, %20 : vector<8x384xi1>, vector<8x384xf32>
    %c0_8 = arith.constant 0 : index
    %c0_9 = arith.constant 0 : index
    %c0_10 = arith.constant 0 : index
    %22 = vector.load %arg4[%c0_8, %c0_9, %c0_10] : memref<1x8x384xf32, #tpu.memory_space<vmem>>, vector<1x8x384xf32>
    %23 = vector.shape_cast %22 : vector<1x8x384xf32> to vector<8x384xf32>
    %24 = vector.shape_cast %21 : vector<8x384xf32> to vector<1x8x384xf32>
    tpu.vector_store %arg4[%c0_8, %c0_9, %c0_10], %24 {strides = array<i32>} : memref<1x8x384xf32, #tpu.memory_space<vmem>>, vector<1x8x384xf32>,
    return
  }
  func.func @transform_0(%arg0: i32) -> (i32, i32, i32) {
    %c0_i32 = arith.constant 0 : i32
    %c0_i32_0 = arith.constant 0 : i32
    %c0_i32_1 = arith.constant 0 : i32
    return %arg0, %c0_i32, %c0_i32_0 : i32, i32, i32
  }
  func.func @transform_1(%arg0: i32) -> (i32, i32) {
    %c0_i32 = arith.constant 0 : i32
    %c0_i32_0 = arith.constant 0 : i32
    %c0_i32_1 = arith.constant 0 : i32
    return %c0_i32, %c0_i32_0 : i32, i32
  }
  func.func @transform_2(%arg0: i32) -> (i32, i32) {
    %c0_i32 = arith.constant 0 : i32
    %c0_i32_0 = arith.constant 0 : i32
    %c0_i32_1 = arith.constant 0 : i32
    return %c0_i32, %c0_i32_0 : i32, i32
  }
  func.func @transform_3(%arg0: i32) -> (i32, i32, i32) {
    %c0_i32 = arith.constant 0 : i32
    %c0_i32_0 = arith.constant 0 : i32
    %c0_i32_1 = arith.constant 0 : i32
    return %arg0, %c0_i32, %c0_i32_0 : i32, i32, i32
  }
}

</mosaic_0001>

<bundles_post_ra>
// kernel: tpu_custom_call.1
= control target key start
LH: loop header
LB: loop body
LE: loop exit
PB: predicated region body
PF: predicated region fallthrough
CT: control target
= control target key end

     0   :  { %8 = vsyncpa [#allocation3], 0  ;;  %s1026_s0 = inlined_call_operand.hbm [shape: bf16[2,4,512], index: 0, kind: input, shape index: {}]   ;;  %s1027_s1 = inlined_call_operand.vmem [shape: bf16[8,36], index: 1, kind: input, shape index: {}]   ;;  %s1028_s2 = inlined_call_operand.vmem [shape: f32[8,1], index: 2, kind: input, shape index: {}]   ;;  %s1029_s3 = inlined_call_operand.hbm [shape: f32[2,8,384], index: 3, kind: output, shape index: {}]  }
   0x1   :  { %10 = vsyncpa [#allocation3 + $0x1], 0 }
   0x2   :  { %11 = vsyncpa [#allocation4], 0 }
   0x3   :  { %13 = vsyncpa [#allocation4 + $0x1], 0  ;;  %s788_s12 = smov 0   ;;  %s790_s13 = smov 0  }
   0x4   :  { %s792_s14 = smov 0   ;;  %s794_s15 = smov 0  }
   0x5 LB: > { %s809_s16 = sadd.s32 4294967295, %s752_s15   ;;  %s564_s17 = sadd.s32 4294967294, %s752_s15   ;;  %s752_s15 = sphi %s794_s15, %s1044_s15   ;;  %s748_s14 = sphi %s792_s14, %s1043_s14   ;;  %s744_s13 = sphi %s790_s13, %s1042_s13   ;;  %s740_s12 = sphi %s788_s12, %s1041_s12  }
   0x6   : > { %s813_s18 = sadd.s32 1, %s752_s15   ;;  %s26_s19 = sadd.s32 1, %s748_s14 }
   0x7   : > { %s23_s20 = ssub.s32 %s752_s15, %s813_s18  ;;  %p33_p0 = scmp.ne.s32.totalorder %s748_s14, %s744_s13 }
   0x8   : > { %p24_p1 = scmp.eq.s32.totalorder %s23_s20, 0  ;;  %p34_p2 = scmp.eq.s32.totalorder %s752_s15, 0 }
   0x9   : > { %p39_p3 = scmp.ne.s32.totalorder %s744_s13, %s740_s12  ;;  %p40_p4 = scmp.eq.s32.totalorder %s809_s16, 0 }
   0xa   : > { %s825_s21 = scalar_select %p24_p1, %s748_s14, %s26_s19  }
   0xb   : > { %p827_p5 = por %p34_p2, %p33_p0  ;;  %p831_p6 = por %p40_p4, %p39_p3 }
   0xc   : > { %p105_p7 = scmp.eq.s32.totalorder %s809_s16, 1  ;;  %p111_p8 = scmp.eq.s32.totalorder %s564_s17, 1 }
   0xd   : > { %p607_p10 = scmp.lt.s32.totalorder %s752_s15, 2  ;;  %s137_s26 = sand.u32 1, %s748_s14  }
   0xe   : > { %p838_p11 = por %p105_p7, %p33_p0  ;;  %p842_p12 = por %p111_p8, %p39_p3 }
   0xf   : > { %s578_s27 = sshll.u32 %s752_s15, 7  ;;  %s567_s28 = sshll.u32 %s137_s26, 3 }
  0x10   : > { %s1033_s24 = scalar_select %p838_p11, 1, 0 }
  0x11   : > { %s1034_s25 = scalar_select %p842_p12, 1, 0 }
  0x12   : > { %s851_s4 = scalar_lea.hbm %s1026_s0, %s578_s27  ;;  %s141_s5 = scalar_lea.vmem [#allocation2], %s567_s28 }
  0x13   : > { %s149_s6 = sshll.u32 %s141_s5, 4  ;;  %p855_p13 = pnand %p607_p10, %p827_p5  ;;  %s859_s6 = int_to_ptr.vmem [resolvable:$true] %s149_s6 }
  0x14   : > { %s138_s8 = scalar_lea.sflag [#allocation3], %s137_s26  ;;  %s656_s9 = scalar_lea.hbm %s851_s4, 128 }
  0x15   : > { %p657_p2 = scmp.ne.s32.totalorder %s851_s4, %s656_s9  ;;  %p658_p3 = pneg %p855_p13 }
  0x16   : > { %s661_s17 = scalar_lea.hbm %s1026_s0, 256  ;;  %p662_p5 = scmp.lt.u32.totalorder %s851_s4, %s1026_s0 }
  0x17   : > { %p659_p4 = pnand %p658_p3, %p657_p2  ;;  %p663_p8 = scmp.lt.u32.totalorder %s661_s17, %s656_s9 }
  0x18   : > { %p665_p9 = scmp.lt.u32.totalorder %s656_s9, %s851_s4 }
  0x19   : > { %p660_p7 = pneg %p659_p4  ;;  %p664_p10 = por %p663_p8, %p662_p5 }
  0x1b   : > { %p666_p0 = por %p665_p9, %p664_p10 }
  0x1d   : > { %p667_p1 = pnand %p666_p0, %p660_p7 }
  0x1f   : > { %670 = shalt.err (!%p667_p1)
}
  0x20   : > { %s671_s22 = scalar_lea.vmem %s859_s6, 128  ;;  %s754_s26 = smov [#allocation2]  }
  0x21   : > { %p672_p2 = scmp.ne.s32.totalorder %s859_s6, %s671_s22  ;;  %s676_s27 = sshll.u32 %s754_s26, 4  ;;  %s677_s27 = int_to_ptr.vmem [resolvable:$false] %s676_s27 }
  0x22   : > { %s678_s28 = scalar_lea.vmem %s677_s27, 256  ;;  %p679_p11 = scmp.lt.s32.totalorder %s859_s6, %s677_s27 }
  0x23   : > { %p674_p4 = pnand %p672_p2, %p658_p3  ;;  %p680_p5 = scmp.lt.s32.totalorder %s678_s28, %s671_s22 }
  0x25   : > { %p675_p12 = pneg %p674_p4  ;;  %p681_p8 = por %p680_p5, %p679_p11 }
  0x27   : > { %p682_p9 = pnand %p681_p8, %p675_p12 }
  0x29   : > { %685 = shalt.err (!%p682_p9)
}
  0x2a   : > { %602 = dma.hbm_to_vmem [thread:$0]  (!%p855_p13), %s851_s4, 128, %s859_s6, %s138_s8  }
  0x2b   : > { %p1036_p0 = scmp.lt.s32.totalorder %s752_s15, 3  ;;  %p1037_p1 = scmp.ge.s32.totalorder %s752_s15, 1 }
  0x2d   : > { %p155_p3 = pnand %p1037_p1, %p1036_p0 }
  0x2e   : > { %s893_s29 = sand.u32 (!%p155_p3), 1, %s744_s13  }
  0x2f   : > { %158 = sbr.rel (%p155_p3) target bundleno = 476 (0x1dc), region = 32  ;;  %s571_s30 = sshll.u32 (!%p155_p3), %s893_s29, 3 }
  0x30   : > { %s161_s5 = scalar_lea.sflag (!%p155_p3), [#allocation3], %s893_s29  ;;  %s164_s9 = scalar_lea.vmem (!%p155_p3), [#allocation2], %s571_s30 }
  0x36   : > { %731 = dma.done.wait (%p831_p6), %s161_s5, 128  }
  0x37   : > { %733 = vsyncadd (%p831_p6), %s161_s5, 4294967168  ;;  %v194_v0 = vlaneseq  ;;  %v755_v1 = vmov 1983009808   ;;  %v188_v6 = vld [vmem:[%s164_s9] sm:$0xff]  ;;  %s756_s4 = smov 126   ;;  %s757_s6 = smov 127  }
  0x38   : > { %v192_v2 = vunpack.c.l.s4 %v755_v1  ;;  %v206_v8 = vcombine.low %v188_v6, %v188_v6  ;;  %v190_v11 = vcombine.high %v188_v6, %v188_v6  ;;  %v758_v16 = vmov 0.0   ;;  %s759_s23 = smov 110   ;;  %s760_s7 = smov 109   ;;  %v367_v20 = vld [vmem:[%s1028_s2] sm:$0xff] }
  0x39   : > { %v195_v3 = vshrl.u32 %v194_v0, 7  ;;  %583 = vmatprep.subr.bf16.mxu1 %v758_v16  ;;  %s761_s8 = smov 108   ;;  %s762_s10 = smov 92   ;;  %v764_v19 = vmov 0   ;;  %vm765_vm0 = vmmov 0   ;;  %vm223_vm1 = vcmask 1039360  }
  0x3a   : > { %v193_v4 = vunpack.c.0.s8 %v192_v2  ;;  %s763_s11 = smov 91   ;;  %418 = vmatprep.mubr.bf16.mxu0 %v764_v19  ;;  %589 = vmatprep.mubr.msk.bf16.mxu1 %vm765_vm0, %v758_v16  ;;  %s766_s17 = smov 90   ;;  %vm237_vm2 = vcmask 1031168   ;;  %vm315_vm3 = vcmask 1041408   ;;  %vm250_vm4 = vcmask 900096  }
  0x3b   : > { %653 = vset.pattern.permute.xlu0 %v764_v19  ;;  %vm332_vm5 = vcmask 1045504   ;;  %vm325_vm6 = vcmask 1043456   ;;  %vm275_vm7 = vcmask 883712   ;;  %vm287_vm8 = vcmask 752640   ;;  %s593_s27 = smul.u32 24, %s893_s29  ;;  %p1038_p11 = scmp.ne.s32.totalorder %s1033_s24, 0 }
  0x3c   : > { %v196_v5 = vsub.s32 %v193_v4, %v195_v3  ;;  %vm263_vm9 = vcmask 891904   ;;  %vm299_vm10 = vcmask 744448   ;;  %vm311_vm11 = vcmask 736256   ;;  %s594_s28 = smul.u32 384, %s809_s16 }
  0x3d   : > { %vm373_vm12 = vcmask 293888   ;;  %s186_s30 = scalar_lea.vmem [#allocation5], %s593_s27 }
  0x3e   : > { %v901_v7 = vrot.slane %v188_v6, %v196_v5  ;;  %v213_v9 = vrot.slane %v206_v8, %v196_v5  ;;  %v911_v14 = vrot.slane %v190_v11, %v196_v5  ;;  %s494_s5 = sshll.u32 %s186_s30, 4  ;;  %s982_s16 = scalar_lea.hbm %s1029_s3, %s594_s28  ;;  %s984_s5 = int_to_ptr.vmem [resolvable:$true] %s494_s5 }
  0x40   : > { %231 = vrot.lane.b32.xlu1 %v901_v7, %s756_s4  ;;  %219 = vrot.lane.b32.xlu0 %v901_v7, %s757_s6  ;;  %v227_v10 = vcombine.low %v901_v7, %v901_v7  ;;  %v214_v12 = vcombine.high %v213_v9, %v213_v9  ;;  %v909_v13 = vcombine.high %v901_v7, %v901_v7 }
  0x41   : > { %v228_v15 = vcombine.low %v911_v14, %v911_v14  ;;  %v241_v17 = vcombine.low %v213_v9, %v213_v9  ;;  %v254_v18 = vcombine.high %v911_v14, %v911_v14 }
  0x44   : > { %215 = vrot.lane.b32.xlu1 %v213_v9, %s757_s6  ;;  %229 = vrot.lane.b32.xlu0 %v227_v10, %s756_s4 }
  0x48   : > { %217 = vrot.lane.b32.xlu0 %v214_v12, %s757_s6  ;;  %221 = vrot.lane.b32.xlu1 %v909_v13, %s757_s6  ;;  %s480_s6 = scalar_lea.sflag [#allocation4], %s893_s29 }
  0x4c   : > { %244 = vrot.lane.b32.xlu1 %v213_v9, %s759_s23  ;;  %233 = vrot.lane.b32.xlu0 %v228_v15, %s756_s4 }
  0x50   : > { %235 = vrot.lane.b32.xlu1 %v911_v14, %s756_s4  ;;  %246 = vrot.lane.b32.xlu0 %v227_v10, %s759_s23 }
  0x54   : > { %248 = vrot.lane.b32.xlu1 %v901_v7, %s759_s23  ;;  %242 = vrot.lane.b32.xlu0 %v241_v17, %s759_s23  ;;  %s686_s23 = scalar_lea.vmem %s984_s5, 384 }
  0x55   : > { %p687_p6 = scmp.ne.s32.totalorder %s984_s5, %s686_s23 }
  0x57   : > { %p688_p12 = pnand %p687_p6, %p1038_p11 }
  0x58   : > { %259 = vrot.lane.b32.xlu1 %v911_v14, %s760_s7  ;;  %257 = vrot.lane.b32.xlu0 %v909_v13, %s760_s7 }
  0x59   : > { %p689_p13 = pneg %p688_p12 }
  0x5c   : > { %271 = vrot.lane.b32.xlu1 %v901_v7, %s761_s8  ;;  %269 = vrot.lane.b32.xlu0 %v214_v12, %s761_s8 }
  0x60   : > { %267 = vrot.lane.b32.xlu1 %v213_v9, %s761_s8  ;;  %255 = vrot.lane.b32.xlu0 %v901_v7, %s760_s7 }
  0x64   : > { %283 = vrot.lane.b32.xlu1 %v228_v15, %s762_s10  ;;  %281 = vrot.lane.b32.xlu0 %v901_v7, %s762_s10 }
  0x68   : > { %273 = vrot.lane.b32.xlu1 %v909_v13, %s761_s8  ;;  %261 = vrot.lane.b32.xlu0 %v254_v18, %s760_s7  ;;  %s767_s7 = smov [#allocation5]  }
  0x69   : > { %s690_s8 = sshll.u32 %s767_s7, 4  ;;  %s691_s8 = int_to_ptr.vmem [resolvable:$false] %s690_s8 }
  0x6a   : > { %p693_p7 = scmp.lt.s32.totalorder %s984_s5, %s691_s8 }
  0x6c   : > { %293 = vrot.lane.b32.xlu1 %v213_v9, %s763_s11  ;;  %279 = vrot.lane.b32.xlu0 %v227_v10, %s762_s10 }
  0x70   : > { %285 = vrot.lane.b32.xlu1 %v911_v14, %s762_s10  ;;  %295 = vrot.lane.b32.xlu0 %v227_v10, %s763_s11  ;;  %s692_s10 = scalar_lea.vmem %s691_s8, 768 }
  0x71   : > { %p694_p10 = scmp.lt.s32.totalorder %s692_s10, %s686_s23 }
  0x73   : > { %p695_p2 = por %p694_p10, %p693_p7 }
  0x74   : > { %297 = vrot.lane.b32.xlu1 %v901_v7, %s763_s11  ;;  %291 = vrot.lane.b32.xlu0 %v241_v17, %s763_s11 }
  0x75   : > { %p696_p4 = pnand %p695_p2, %p689_p13 }
  0x78   : > { %305 = vrot.lane.b32.xlu1 %v909_v13, %s766_s17  ;;  %303 = vrot.lane.b32.xlu0 %v901_v7, %s766_s17 }
  0x7c   : > { %309 = vrot.lane.b32.xlu1 %v254_v18, %s766_s17  ;;  %307 = vrot.lane.b32.xlu0 %v911_v14, %s766_s17 }
  0x80   : > { %370 = vperm.xlu0 %653, %v367_v20  }
  0xb2   : > { %v232_v21 = vpop.permute.xlu1 %231  ;;  %v220_v22 = vpop.permute.xlu0 %219 }
  0xb6   : > { %v216_v23 = vpop.permute.xlu1 %215  ;;  %v230_v24 = vpop.permute.xlu0 %229 }
  0xb7   : > { %v238_v41 = vsel %vm237_vm2, %v230_v24, %v232_v21 }
  0xba   : > { %v218_v25 = vpop.permute.xlu0 %217  ;;  %v222_v26 = vpop.permute.xlu1 %221 }
  0xbb   : > { %v225_v29 = vsel %vm223_vm1, %v218_v25, %v220_v22  ;;  %v224_v31 = vsel %vm223_vm1, %v216_v23, %v218_v25  ;;  %v226_v35 = vsel %vm223_vm1, %v220_v22, %v222_v26 }
  0xbc   : > { %v321_v32 = vsel %vm315_vm3, %v909_v13, %v225_v29  ;;  %v318_v38 = vsel %vm315_vm3, %v901_v7, %v224_v31  ;;  %v324_v42 = vsel %vm315_vm3, %v911_v14, %v226_v35 }
  0xbd   : > { %v327_v47 = vsel %vm325_vm6, %v318_v38, %v238_v41 }
  0xbe   : > { %v245_v27 = vpop.permute.xlu1 %244  ;;  %v234_v28 = vpop.permute.xlu0 %233 }
  0xbf   : > { %v239_v30 = vsel %vm237_vm2, %v232_v21, %v234_v28 }
  0xc0   : > { %v329_v37 = vsel %vm325_vm6, %v321_v32, %v239_v30 }
  0xc2   : > { %v236_v33 = vpop.permute.xlu1 %235  ;;  %v247_v34 = vpop.permute.xlu0 %246 }
  0xc3   : > { %v252_v36 = vsel %vm250_vm4, %v245_v27, %v247_v34  ;;  %v240_v39 = vsel %vm237_vm2, %v234_v28, %v236_v33 }
  0xc4   : > { %v337_v40 = vsel %vm332_vm5, %v329_v37, %v252_v36  ;;  %v331_v48 = vsel %vm325_vm6, %v324_v42, %v240_v39 }
  0xc5   : > { %386 = vmatprep.subr.bf16.mxu0 %v337_v40 }
  0xc6   : > { %v249_v43 = vpop.permute.xlu1 %248  ;;  %v243_v44 = vpop.permute.xlu0 %242 }
  0xc7   : > { %v253_v45 = vsel %vm250_vm4, %v247_v34, %v249_v43  ;;  %v251_v46 = vsel %vm250_vm4, %v243_v44, %v245_v27  ;;  %v366_v34 = vld [vmem:[%s1027_s1] sm:$0xf] }
  0xc8   : > { %v334_v49 = vsel %vm332_vm5, %v327_v47, %v251_v46  ;;  %v340_v50 = vsel %vm332_vm5, %v331_v48, %v253_v45 }
  0xc9   : > { %387 = vmatpush1.bf16.msra.mxu0 %v334_v49  ;;  %584 = vmatpush3.bf16.msra.mxu1 %v340_v50 }
  0xca   : > { %v260_v51 = vpop.permute.xlu1 %259  ;;  %v258_v52 = vpop.permute.xlu0 %257  ;;  %585 = vmatprep.subr.bf16.mxu1 %v758_v16 }
  0xcb   : > { %v265_v1 = vsel %vm263_vm9, %v258_v52, %v260_v51 }
  0xce   : > { %v272_v53 = vpop.permute.xlu1 %271  ;;  %v270_v54 = vpop.permute.xlu0 %269 }
  0xcf   : > { %v277_v63 = vsel %vm275_vm7, %v270_v54, %v272_v53 }
  0xd0   : > { %v347_v2 = vsel %vm315_vm3, %v265_v1, %v277_v63 }
  0xd2   : > { %v268_v55 = vpop.permute.xlu1 %267  ;;  %v256_v56 = vpop.permute.xlu0 %255 }
  0xd3   : > { %v276_v3 = vsel %vm275_vm7, %v268_v55, %v270_v54  ;;  %v264_v4 = vsel %vm263_vm9, %v256_v56, %v258_v52 }
  0xd4   : > { %v344_v14 = vsel %vm315_vm3, %v264_v4, %v276_v3 }
  0xd6   : > { %v284_v57 = vpop.permute.xlu1 %283  ;;  %v282_v58 = vpop.permute.xlu0 %281 }
  0xd7   : > { %v289_v0 = vsel %vm287_vm8, %v282_v58, %v284_v57 }
  0xd8   : > { %v354_v10 = vsel %vm325_vm6, %v347_v2, %v289_v0 }
  0xda   : > { %v274_v59 = vpop.permute.xlu1 %273  ;;  %v262_v60 = vpop.permute.xlu0 %261 }
  0xdb   : > { %v278_v7 = vsel %vm275_vm7, %v272_v53, %v274_v59  ;;  %v266_v8 = vsel %vm263_vm9, %v260_v51, %v262_v60 }
  0xdc   : > { %v350_v15 = vsel %vm315_vm3, %v266_v8, %v278_v7 }
  0xde   : > { %v294_v61 = vpop.permute.xlu1 %293  ;;  %v280_v62 = vpop.permute.xlu0 %279 }
  0xdf   : > { %v288_v11 = vsel %vm287_vm8, %v280_v62, %v282_v58 }
  0xe0   : > { %v352_v21 = vsel %vm325_vm6, %v344_v14, %v288_v11 }
  0xe2   : > { %v286_v5 = vpop.permute.xlu1 %285  ;;  %v296_v6 = vpop.permute.xlu0 %295 }
  0xe3   : > { %v301_v9 = vsel %vm299_vm10, %v294_v61, %v296_v6  ;;  %v290_v12 = vsel %vm287_vm8, %v284_v57, %v286_v5 }
  0xe4   : > { %v361_v13 = vsel %vm332_vm5, %v354_v10, %v301_v9  ;;  %v356_v22 = vsel %vm325_vm6, %v350_v15, %v290_v12 }
  0xe5   : > { %388 = vmatprep.subr.bf16.mxu0 %v361_v13 }
  0xe6   : > { %v298_v17 = vpop.permute.xlu1 %297  ;;  %v292_v18 = vpop.permute.xlu0 %291 }
  0xe7   : > { %v302_v19 = vsel %vm299_vm10, %v296_v6, %v298_v17  ;;  %v300_v20 = vsel %vm299_vm10, %v292_v18, %v294_v61 }
  0xe8   : > { %v358_v23 = vsel %vm332_vm5, %v352_v21, %v300_v20  ;;  %v364_v24 = vsel %vm332_vm5, %v356_v22, %v302_v19 }
  0xe9   : > { %389 = vmatpush1.bf16.msra.mxu0 %v358_v23  ;;  %586 = vmatpush3.bf16.msra.mxu1 %v364_v24 }
  0xea   : > { %v306_v25 = vpop.permute.xlu1 %305  ;;  %v304_v26 = vpop.permute.xlu0 %303  ;;  %587 = vmatprep.subr.bf16.mxu1 %v758_v16 }
  0xeb   : > { %v312_v27 = vsel %vm311_vm11, %v304_v26, %v306_v25 }
  0xec   : > { %v378_v32 = vsel %vm315_vm3, %v312_v27, 0 }
  0xee   : > { %v310_v28 = vpop.permute.xlu1 %309  ;;  %v308_v29 = vpop.permute.xlu0 %307 }
  0xef   : > { %v313_v30 = vsel %vm311_vm11, %v306_v25, %v308_v29  ;;  %v314_v31 = vsel %vm311_vm11, %v308_v29, %v310_v28 }
  0xf0   : > { %572 = vmatprep.subr.msk.bf16.mxu0 %vm315_vm3, %v313_v30  ;;  %v384_v33 = vsel %vm315_vm3, %v314_v31, 0 }
  0xf1   : > { %391 = vmatpush1.bf16.msra.mxu0 %v378_v32  ;;  %588 = vmatpush3.bf16.msra.mxu1 %v384_v33 }
  0xf4   : > { %573 = vmatmul.mubr.msk.bf16.vlgmr.msra.gmra.mrb[0].mxu0 %vm373_vm12, %v366_v34  ;;  %590 = vmatmul.mubr.msk.bf16.vlgmr.msra.gmra.mrb[0].mxu1 %vm373_vm12, %v366_v34 }
  0xff   : > { %v371_v16 = vpop.permute.xlu0 %370 }
 0x1c7   : > { %v420_v35 = vpop.f32.mrb[0].mxu0  ;;  %v461_v36 = vpop.f32.mrb[0].mxu1 }
 0x1c8   : > { %v421_v37 = vadd.f32 %v420_v35, %v371_v16  ;;  %v462_v38 = vadd.f32 %v461_v36, %v371_v16  ;;  %v422_v39 = vpop.f32.mrb[1].mxu0  ;;  %v591_v40 = vpop.f32.mrb[1].mxu1 }
 0x1c9   : > { %v423_v41 = vadd.f32 %v422_v39, %v371_v16  ;;  %v424_v42 = vpop.f32.mrb[2].mxu0  ;;  %v464_v43 = vpop.f32.mrb[2].mxu1 }
 0x1ca   : > { %vm467_vm13 = vcmp.ge.f32.partialorder %v421_v37, 0.0  ;;  %vm469_vm14 = vcmp.ge.f32.partialorder %v462_v38, 0.0  ;;  %v470_v44 = vmul.f32 0.01, %v421_v37  ;;  %v472_v45 = vmul.f32 0.01, %v462_v38 }
 0x1cb   : > { %vm468_vm15 = vcmp.ge.f32.partialorder %v423_v41, 0.0  ;;  %v471_v46 = vmul.f32 0.01, %v423_v41  ;;  %v425_v47 = vpop.f32.mrb[3].mxu0  ;;  %v592_v48 = vpop.f32.mrb[3].mxu1 }
 0x1cc   : > { %v473_v49 = vsel %vm467_vm13, %v421_v37, %v470_v44  ;;  %v475_v50 = vsel %vm469_vm14, %v462_v38, %v472_v45 }
 0x1cd   : > { %476 = vst [vmem:[%s186_s30] sm:$0xff] %v473_v49  ;;  %478 = vst [vmem:[%s186_s30 + $0x10] sm:$0xff] %v475_v50  ;;  %v474_v51 = vsel %vm468_vm15, %v423_v41, %v471_v46 }
 0x1ce   : > { %477 = vst [vmem:[%s186_s30 + $0x8] sm:$0xff] %v474_v51 }
 0x1cf   : > { %699 = shalt.err (!%p696_p4)
}
 0x1d0   : > { %s700_s29 = scalar_lea.hbm %s982_s16, 384  ;;  %s704_s19 = scalar_lea.hbm %s1029_s3, 768 }
 0x1d1   : > { %p701_p5 = scmp.ne.s32.totalorder %s982_s16, %s700_s29  ;;  %p705_p0 = scmp.lt.u32.totalorder %s982_s16, %s1029_s3 }
 0x1d2   : > { %p706_p1 = scmp.lt.u32.totalorder %s704_s19, %s700_s29  ;;  %p708_p6 = scmp.lt.u32.totalorder %s700_s29, %s982_s16 }
 0x1d3   : > { %p702_p8 = pnand %p701_p5, %p1038_p11 }
 0x1d4   : > { %p707_p3 = por %p706_p1, %p705_p0 }
 0x1d5   : > { %p703_p9 = pneg %p702_p8 }
 0x1d6   : > { %p709_p12 = por %p708_p6, %p707_p3 }
 0x1d8   : > { %p710_p13 = pnand %p709_p12, %p703_p9 }
 0x1da   : > { %713 = shalt.err (!%p710_p13)
}
 0x1db   : > { %597 = dma.vmem_to_hbm [thread:$0]  (%p1038_p11), %s984_s5, 384, %s982_s16, %s480_s6  }
 0x1dc PF: > { %s506_s26 = sand.u32 1, %s740_s12   ;;  %p1039_p7 = scmp.ne.s32.totalorder %s1034_s25, 0 }
 0x1dd   : > { %p1040_p10 = scmp.ge.s32.totalorder %s752_s15, 2  ;;  %s507_s27 = scalar_lea.sflag [#allocation4], %s506_s26 }
 0x1df   : > { %p604_p2 = pnand %p1040_p10, %p1039_p7 }
 0x1e1   : > { %735 = dma.done.wait (!%p604_p2), %s507_s27, 384  }
 0x1e2   : > { %737 = vsyncadd (!%p604_p2), %s507_s27, 4294966912  ;;  %p16_p4 = scmp.ge.s32.totalorder %s813_s18, 4   ;;  %s1041_s12 = smov %s744_s13 }
 0x1e3   : > { %s1042_s13 = smov %s748_s14  ;;  %s1043_s14 = smov %s825_s21 }
 0x1e4   : > { %s1044_s15 = smov %s813_s18  ;;  %18 = sbr.rel (!%p16_p4) target bundleno = 5 (0x5), region = 77 }
 0x1eb   :  { %512 = vsyncpa [#allocation3], 1 }
 0x1ec   :  { %514 = vsyncpa [#allocation3 + $0x1], 1 }
 0x1ed   :  { %515 = vsyncpa [#allocation4], 1 }
 0x1ee   :  { %517 = vsyncpa [#allocation4 + $0x1], 1 }

</bundles_post_ra>
